<compile_context>
chip_gen: v7x
topology: tpu7x:2x2x1
jax: 0.10.0
libtpu: 0.0.40
codegen_flags: <defaults>
</compile_context>

<pallas_src>
import jax
import jax.numpy as jnp
from jax.experimental import pallas as pl
from jax.experimental.pallas import tpu as pltpu


def exit_block_kernel(x_ref, w_ref, b_ref, o_ref):
    # x_ref: (TN, C*L) in input dtype, w_ref: (C*L, H_pad), b_ref: (1, H_pad)
    # Fused pool + linear: one MXU matmul with f32 accumulation.
    y = jnp.dot(x_ref[...], w_ref[...], preferred_element_type=jnp.float32)
    y = y + b_ref[...].astype(jnp.float32)
    # ReLU, cast back to output dtype, lane-dense (H_pad multiple of 128) store.
    o_ref[...] = jnp.maximum(y, 0.0).astype(o_ref.dtype)


def exit_block_forward(x, weight, bias, *, tile_n=None):
    """x: (N, C, L); weight: (H, C) PyTorch convention; bias: (H,). Returns (N, H)."""
    N, C, L = x.shape
    H = weight.shape[0]
    CL = C * L
    dtype = x.dtype
    itemsize = jnp.dtype(dtype).itemsize

    # --- Weight prep: fold 1/L of the mean into the weight and expand so the
    #     pool is absorbed by the matmul.  W_exp[c*L + l, h] = weight[h, c] / L.
    w_exp = jnp.repeat(weight.T.astype(jnp.float32) / jnp.float32(L), L, axis=0)  # (CL, H)

    # --- Lane-dense output: pad H up to a multiple of 128.
    H_pad = ((H + 127) // 128) * 128
    if H_pad != H:
        w_exp = jnp.pad(w_exp, ((0, 0), (0, H_pad - H)))
        b_pad = jnp.pad(bias.astype(jnp.float32), (0, H_pad - H))
    else:
        b_pad = bias.astype(jnp.float32)
    w_exp = w_exp.astype(dtype)          # keep the MXU input in x's dtype (bf16 stays bf16)
    b2 = b_pad.reshape(1, H_pad)         # bias added in f32 inside the kernel

    # --- Tile the batch dimension.  Keep the double-buffered x tile + resident
    #     expanded weight comfortably under ~16 MiB so it fits the scoped-VMEM
    #     budget on every generation (v7x has only 64 MiB physical VMEM).
    if tile_n is None:
        budget = 16 * 1024 * 1024
        max_tn = max(8, budget // (2 * CL * itemsize))
        tile_n = int(min(512, max_tn))
        tile_n = max(8, (tile_n // 8) * 8)
    n_round8 = ((N + 7) // 8) * 8
    tile_n = min(tile_n, n_round8)       # don't over-pad tiny batches

    N_pad = ((N + tile_n - 1) // tile_n) * tile_n
    x2d = x.reshape(N, CL)               # free row-major metadata reshape (pool fused)
    if N_pad != N:
        x2d = jnp.pad(x2d, ((0, N_pad - N), (0, 0)))

    grid = (N_pad // tile_n,)

    out = pl.pallas_call(
        exit_block_kernel,
        out_shape=jax.ShapeDtypeStruct((N_pad, H_pad), dtype),
        grid=grid,
        in_specs=[
            pl.BlockSpec((tile_n, CL), lambda i: (i, 0)),   # streamed, double-buffered
            pl.BlockSpec((CL, H_pad), lambda i: (0, 0)),    # VMEM-resident weight
            pl.BlockSpec((1, H_pad), lambda i: (0, 0)),     # VMEM-resident bias
        ],
        out_specs=pl.BlockSpec((tile_n, H_pad), lambda i: (i, 0)),
        compiler_params=pltpu.CompilerParams(
            dimension_semantics=("parallel",),              # shards across v7x's 2 TCs
            vmem_limit_bytes=64 << 20,                      # v5e default scoped is 16 MiB
        ),
    )(x2d, w_exp, b2)

    return out[:N, :H]


if __name__ == "__main__":
    # Small shapes consistent with the module's forward:
    #   x: (batch, in_channels, length) = (2, 4, 16)
    #   Linear(in_channels=4, hidden_sizes=32)
    N, C, L, H = 2, 4, 16, 32

    key = jax.random.PRNGKey(0)
    kx, kw, kb = jax.random.split(key, 3)

    x = jax.random.normal(kx, (N, C, L), dtype=jnp.float32)

    # Deterministic parameter init mimicking nn.Linear defaults:
    # U(-1/sqrt(C), 1/sqrt(C)) for both weight and bias.
    bound = 1.0 / jnp.sqrt(jnp.float32(C))
    weight = jax.random.uniform(kw, (H, C), minval=-bound, maxval=bound,
                                dtype=jnp.float32)
    bias = jax.random.uniform(kb, (H,), minval=-bound, maxval=bound,
                              dtype=jnp.float32)

    out = exit_block_forward(x, weight, bias)
    out = jax.block_until_ready(out)

    # Sanity check against a pure-JAX reference of the same forward pass.
    ref = jnp.maximum(jnp.mean(x, axis=-1) @ weight.T + bias, 0.0)
    assert out.shape == (N, H)
    assert jnp.allclose(out, ref, atol=1e-5, rtol=1e-5)

    print("KERNEL_OK")
</pallas_src>

<mosaic_0001>
module attributes {stable_mosaic.version = 11 : i64} {
  func.func @exit_block_kernel(%arg0: i32, %arg1: memref<8x64xf32, #tpu.memory_space<vmem>>, %arg2: memref<64x128xf32, #tpu.memory_space<vmem>>, %arg3: memref<1x128xf32, #tpu.memory_space<vmem>>, %arg4: memref<8x128xf32, #tpu.memory_space<vmem>>) attributes {dimension_semantics = [#tpu.dimension_semantics<parallel>], iteration_bounds = array<i64: 1>, scalar_prefetch = 0 : i64, scratch_operands = 0 : i64, tpu.core_type = #tpu.core_type<tc>, window_params = [{transform_indices = @transform_0, window_bounds = array<i64: 8, 64>}, {pipeline_mode = #tpu.pipeline_mode<synchronous>, transform_indices = @transform_1, window_bounds = array<i64: 64, 128>}, {pipeline_mode = #tpu.pipeline_mode<synchronous>, transform_indices = @transform_2, window_bounds = array<i64: 1, 128>}, {transform_indices = @transform_3, window_bounds = array<i64: 8, 128>}]} {
    %c0 = arith.constant 0 : index
    %c0_0 = arith.constant 0 : index
    %0 = vector.load %arg1[%c0, %c0_0] : memref<8x64xf32, #tpu.memory_space<vmem>>, vector<8x64xf32>
    %c0_1 = arith.constant 0 : index
    %c0_2 = arith.constant 0 : index
    %1 = vector.load %arg2[%c0_1, %c0_2] : memref<64x128xf32, #tpu.memory_space<vmem>>, vector<64x128xf32>
    %cst = arith.constant dense<0.000000e+00> : vector<8x128xf32>
    %2 = tpu.matmul %0, %1, %cst {dimension_numbers = #tpu.dot_dimension_numbers<[1], [0], [0], [1], [0, 0, 1, 1], [], []>} : vector<8x64xf32>, vector<64x128xf32>, vector<8x128xf32> -> vector<8x128xf32>
    %c0_3 = arith.constant 0 : index
    %c0_4 = arith.constant 0 : index
    %3 = vector.load %arg3[%c0_3, %c0_4] : memref<1x128xf32, #tpu.memory_space<vmem>>, vector<1x128xf32>
    %4 = vector.broadcast %3 : vector<1x128xf32> to vector<8x128xf32>
    %5 = arith.addf %2, %4 : vector<8x128xf32>
    %cst_5 = arith.constant 0.000000e+00 : f32
    %6 = vector.broadcast %cst_5 : f32 to vector<8x128xf32>
    %7 = arith.maximumf %5, %6 : vector<8x128xf32>
    %c0_6 = arith.constant 0 : index
    %c0_7 = arith.constant 0 : index
    %8 = vector.load %arg4[%c0_6, %c0_7] : memref<8x128xf32, #tpu.memory_space<vmem>>, vector<8x128xf32>
    tpu.vector_store %arg4[%c0_6, %c0_7], %7 {strides = array<i32>} : memref<8x128xf32, #tpu.memory_space<vmem>>, vector<8x128xf32>,
    return
  }
  func.func @transform_0(%arg0: i32) -> (i32, i32) {
    %c0_i32 = arith.constant 0 : i32
    %c0_i32_0 = arith.constant 0 : i32
    return %arg0, %c0_i32 : i32, i32
  }
  func.func @transform_1(%arg0: i32) -> (i32, i32) {
    %c0_i32 = arith.constant 0 : i32
    %c0_i32_0 = arith.constant 0 : i32
    %c0_i32_1 = arith.constant 0 : i32
    return %c0_i32, %c0_i32_0 : i32, i32
  }
  func.func @transform_2(%arg0: i32) -> (i32, i32) {
    %c0_i32 = arith.constant 0 : i32
    %c0_i32_0 = arith.constant 0 : i32
    %c0_i32_1 = arith.constant 0 : i32
    return %c0_i32, %c0_i32_0 : i32, i32
  }
  func.func @transform_3(%arg0: i32) -> (i32, i32) {
    %c0_i32 = arith.constant 0 : i32
    %c0_i32_0 = arith.constant 0 : i32
    return %arg0, %c0_i32 : i32, i32
  }
}

</mosaic_0001>

<bundles_post_ra>
// kernel: tpu_custom_call.1
= control target key start
LH: loop header
LB: loop body
LE: loop exit
PB: predicated region body
PF: predicated region fallthrough
CT: control target
= control target key end

     0   :  { %8 = vsyncpa [#allocation3], 0  ;;  %s382_s0 = inlined_call_operand.hbm [shape: f32[8,64], index: 0, kind: input, shape index: {}]   ;;  %s383_s1 = inlined_call_operand.hbm [shape: f32[64,128], index: 1, kind: input, shape index: {}]   ;;  %s384_s2 = inlined_call_operand.hbm [shape: f32[1,128], index: 2, kind: input, shape index: {}]   ;;  %s385_s3 = inlined_call_operand.hbm [shape: f32[8,128], index: 3, kind: output, shape index: {}]  }
   0x1   :  { %9 = vsyncpa [#allocation6], 0 }
   0x2   :  { %10 = vsyncpa [#allocation4], 0  ;;  %s305_s12 = smov [#allocation5]   ;;  %s211_s16 = scalar_lea.hbm %s383_s1, 1024 }
   0x3   :  { %s26_s13 = sshll.u32 %s305_s12, 4  ;;  %p212_p0 = scmp.ne.s32.totalorder %s383_s1, %s211_s16  ;;  %s27_s13 = int_to_ptr.vmem [resolvable:$true] %s26_s13 }
   0x4   :  { %p215_p1 = scmp.lt.u32.totalorder %s211_s16, %s383_s1 }
   0x6   :  { %p217_p2 = pnand %p215_p1, %p212_p0 }
   0x8   :  { %220 = shalt.err (!%p217_p2)
}
   0x9   :  { %s221_s21 = scalar_lea.vmem %s27_s13, 1024  ;;  %p226_p4 = scmp.lt.s32.totalorder %s27_s13, %s27_s13 }
   0xa   :  { %p222_p3 = scmp.ne.s32.totalorder %s27_s13, %s221_s21  ;;  %p227_p5 = scmp.lt.s32.totalorder %s221_s21, %s221_s21 }
   0xc   :  { %p228_p6 = por %p227_p5, %p226_p4 }
   0xe   :  { %p229_p7 = pnand %p228_p6, %p222_p3 }
  0x10   :  { %232 = shalt.err (!%p229_p7)
}
  0x11   :  { %s306_s22 = smov 128   ;;  %s307_s23 = smov 8  }
  0x12   :  { %32 = dma.hbm_to_vmem [thread:$0]  %s383_s1, 1024, %s27_s13, [#allocation6], %s306_s22, %s306_s22, %s307_s23  }
  0x13   :  { %s308_s26 = smov [#allocation2]   ;;  %s309_s28 = smov [#allocation7]  }
  0x14   :  { %s17_s27 = sshll.u32 %s308_s26, 4  ;;  %s39_s29 = sshll.u32 %s309_s28, 4  ;;  %s18_s27 = int_to_ptr.vmem [resolvable:$true] %s17_s27  ;;  %s40_s29 = int_to_ptr.vmem [resolvable:$true] %s39_s29 }
  0x15   :  { %s233_s5 = scalar_lea.hbm %s382_s0, 128 }
  0x16   :  { %p234_p8 = scmp.ne.s32.totalorder %s382_s0, %s233_s5  ;;  %p237_p9 = scmp.lt.u32.totalorder %s233_s5, %s382_s0 }
  0x18   :  { %p239_p10 = pnand %p237_p9, %p234_p8 }
  0x1a   :  { %242 = shalt.err (!%p239_p10)
}
  0x1b   :  { %s243_s1 = scalar_lea.vmem %s18_s27, 128  ;;  %p248_p12 = scmp.lt.s32.totalorder %s18_s27, %s18_s27 }
  0x1c   :  { %p244_p11 = scmp.ne.s32.totalorder %s18_s27, %s243_s1  ;;  %p249_p13 = scmp.lt.s32.totalorder %s243_s1, %s243_s1 }
  0x1e   :  { %p250_p0 = por %p249_p13, %p248_p12 }
  0x20   :  { %p251_p1 = pnand %p250_p0, %p244_p11 }
  0x22   :  { %254 = shalt.err (!%p251_p1)
}
  0x23   :  { %20 = dma.hbm_to_vmem [thread:$0]  %s382_s0, 128, %s18_s27, [#allocation3]  }
  0x24   :  { %s255_s14 = scalar_lea.hbm %s384_s2, 16 }
  0x25   :  { %p256_p2 = scmp.ne.s32.totalorder %s384_s2, %s255_s14  ;;  %p259_p3 = scmp.lt.u32.totalorder %s255_s14, %s384_s2 }
  0x27   :  { %p261_p4 = pnand %p259_p3, %p256_p2 }
  0x29   :  { %264 = shalt.err (!%p261_p4)
}
  0x2a   :  { %s265_s19 = scalar_lea.vmem %s40_s29, 16  ;;  %s269_s20 = scalar_lea.vmem %s40_s29, 32 }
  0x2b   :  { %p266_p5 = scmp.ne.s32.totalorder %s40_s29, %s265_s19  ;;  %p270_p6 = scmp.lt.s32.totalorder %s40_s29, %s40_s29 }
  0x2c   :  { %p271_p7 = scmp.lt.s32.totalorder %s269_s20, %s265_s19 }
  0x2e   :  { %p272_p8 = por %p271_p7, %p270_p6 }
  0x30   :  { %p273_p9 = pnand %p272_p8, %p266_p5 }
  0x32   :  { %276 = shalt.err (!%p273_p9)
}
  0x33   :  { %42 = dma.hbm_to_vmem [thread:$0]  %s384_s2, 16, %s40_s29, [#allocation6]  }
  0x34   :  { %299 = dma.done.wait [#allocation3], 128  }
  0x35   :  { %300 = vsyncadd [#allocation3], 4294967168 }
  0x36   :  { %301 = dma.done.wait [#allocation6], 1040  }
  0x37   :  { %302 = vsyncadd [#allocation6], 4294966256  ;;  %v310_v0 = vmov 0.0|0.0   ;;  %vm311_vm0 = vmmov 0   ;;  %v312_v1 = vmov 0.0   ;;  %v53_v2 = vld [vmem:[#allocation5] sm:$0xff] }
  0x38   :  { %190 = vmatprep.subr.bf16.mxu0 %v310_v0  ;;  %187 = vmatprep.mubr.msk.f32.mxu0 %vm311_vm0, %v312_v1  ;;  %v54_v3 = vld [vmem:[#allocation5 + $0x8] sm:$0xff]  ;;  %v55_v4 = vld [vmem:[#allocation5 + $0x10] sm:$0xff]  ;;  %v56_v6 = vld [vmem:[#allocation5 + $0x18] sm:$0xff]  ;;  %vm68_vm1 = vcmask 523264   ;;  %s313_s2 = smov [#allocation8]  }
  0x39   :  { %v191_v5 = vpack.c.bf16 %v54_v3, %v53_v2  ;;  %v194_v7 = vpack.c.bf16 %v56_v6, %v55_v4  ;;  %v57_v8 = vld [vmem:[#allocation5 + $0x20] sm:$0xff]  ;;  %v58_v9 = vld [vmem:[#allocation5 + $0x28] sm:$0xff]  ;;  %v59_v11 = vld [vmem:[#allocation5 + $0x30] sm:$0xff]  ;;  %s150_s22 = sshll.u32 %s313_s2, 4  ;;  %s151_s22 = int_to_ptr.vmem [resolvable:$true] %s150_s22 }
  0x3a   :  { %v197_v10 = vpack.c.bf16 %v58_v9, %v57_v8  ;;  %v60_v12 = vld [vmem:[#allocation5 + $0x38] sm:$0xff]  ;;  %v160_v15 = vld [vmem:[#allocation7] ss:$0 sm:$0xff]  ;;  %s277_s23 = scalar_lea.vmem %s151_s22, 128  ;;  %p282_p11 = scmp.lt.s32.totalorder %s151_s22, %s151_s22 }
  0x3b   :  { %192 = vmatpush3.bf16.msra.mxu0 %v191_v5  ;;  %v200_v13 = vpack.c.bf16 %v60_v12, %v59_v11  ;;  %v52_v14 = vld [vmem:[#allocation2] sm:$0xff]  ;;  %p278_p10 = scmp.ne.s32.totalorder %s151_s22, %s277_s23  ;;  %p283_p12 = scmp.lt.s32.totalorder %s277_s23, %s277_s23 }
  0x3c   :  { %193 = vmatprep.subr.bf16.mxu0 %v310_v0 }
  0x3d   :  { %p284_p13 = por %p283_p12, %p282_p11 }
  0x3f   :  { %195 = vmatpush3.bf16.msra.mxu0 %v194_v7  ;;  %p285_p0 = pnand %p284_p13, %p278_p10 }
  0x40   :  { %196 = vmatprep.subr.bf16.mxu0 %v310_v0 }
  0x43   :  { %198 = vmatpush3.bf16.msra.mxu0 %v197_v10 }
  0x44   :  { %199 = vmatprep.subr.bf16.mxu0 %v310_v0 }
  0x47   :  { %201 = vmatpush3.bf16.msra.mxu0 %v200_v13 }
  0x4a   :  { %188 = vmatmul.mubr.msk.f32.vlgmr.msra.gmra.mrb[0].mxu0 %vm68_vm1, %v52_v14 }
 0x11d   :  { %v138_v16 = vpop.f32.mrb[0].mxu0 }
 0x11e   :  { %v139_v17 = vadd.f32 %v160_v15, %v138_v16  ;;  %v189_v18 = vpop.f32.mrb[1].mxu0 }
 0x120   :  { %v142_v19 = vmax.f32 %v139_v17, 0.0 }
 0x122   :  { %143 = vst [vmem:[#allocation8] sm:$0xff] %v142_v19 }
 0x123   :  { %288 = shalt.err (!%p285_p0)
}
 0x124   :  { %s289_s26 = scalar_lea.hbm %s385_s3, 128 }
 0x125   :  { %p290_p1 = scmp.ne.s32.totalorder %s385_s3, %s289_s26  ;;  %p293_p2 = scmp.lt.u32.totalorder %s289_s26, %s385_s3 }
 0x127   :  { %p295_p3 = pnand %p293_p2, %p290_p1 }
 0x129   :  { %298 = shalt.err (!%p295_p3)
}
 0x12a   :  { %153 = dma.vmem_to_hbm [thread:$0]  %s151_s22, 128, %s385_s3, [#allocation4]  }
 0x12b   :  { %303 = dma.done.wait [#allocation4], 128  }
 0x12c   :  { %304 = vsyncadd [#allocation4], 4294967168 }
 0x12d   :  { %157 = vsyncpa [#allocation3], 1 }
 0x12e   :  { %158 = vsyncpa [#allocation6], 1 }
 0x12f   :  { %159 = vsyncpa [#allocation4], 1 }

</bundles_post_ra>
